<compile_context>
chip_gen: v7x
topology: tpu7x:2x2x1
jax: 0.10.0
libtpu: 0.0.40
codegen_flags: <defaults>
</compile_context>

<pallas_src>
import jax
import jax.numpy as jnp
from jax.experimental import pallas as pl
from jax.experimental.pallas import tpu as pltpu


# ----------------------------------------------------------------------------
# Pallas kernel: one row-tile of   y = x @ W.T + b   with W stored as a (1, K) row
# ----------------------------------------------------------------------------
def _critic_head_kernel(x_ref, w_ref, b_ref, o_ref):
    # Upcast in vregs (avoids a separate full-array HBM cast pass in the wrapper).
    x = x_ref[...].astype(jnp.float32)                 # (TM, K) f32
    w = w_ref[...]                                     # (1, K)  f32, broadcast over rows
    # VPU multiply + XLU cross-lane reduce; output width 1 makes the vector path
    # the right unit (MXU would waste 127/128 result lanes).
    acc = jnp.sum(x * w, axis=-1, keepdims=True)       # (TM, 1) f32
    o_ref[...] = (acc + b_ref[0]).astype(o_ref.dtype)  # scalar bias from SMEM


# ----------------------------------------------------------------------------
# Tile-size selection (HBM-bandwidth-bound kernel: big tiles, bounded VMEM)
# ----------------------------------------------------------------------------
def _choose_block_m(B, K, itemsize):
    if B <= 128:
        # Single full-array block: bypasses the (8,128) tiling constraint entirely.
        return B
    row_bytes = K * itemsize
    # Target ~2 MiB per x tile to amortize the ~0.35 us/step pipeline overhead.
    target = max(1, (2 * 1024 * 1024) // row_bytes)
    # Budget: 2 double-buffered input tiles + one f32 (TM, K) intermediate <= 12 MiB
    # (fits v5e's 16 MiB default scoped VMEM; well under v7x's 64 MiB physical).
    cap = max(1, (12 * 1024 * 1024) // (K * (2 * itemsize + 4)))
    tm = min(target, cap, 1024)
    tm = max(128, (tm // 128) * 128)   # multiple of 128 rows (also fine for bf16 packing)
    # v7x shards the "parallel" axis across 2 TensorCores: keep >= 2 grid steps.
    half = (B + 1) // 2
    half = ((half + 127) // 128) * 128
    return min(tm, max(128, half))


# ----------------------------------------------------------------------------
# Wrapper
# ----------------------------------------------------------------------------
def critic_head(x, weight, bias, *, block_m=None):
    """CriticHead.forward:  x (B, K), weight (1, K), bias (1,)  ->  (B, 1)."""
    B, K = x.shape
    w_row = weight.reshape(1, K).astype(jnp.float32)
    b = bias.reshape(1).astype(jnp.float32)

    tm = block_m if block_m is not None else _choose_block_m(B, K, x.dtype.itemsize)
    grid_m = pl.cdiv(B, tm)   # partial last block: reads junk rows, store masked past B

    return pl.pallas_call(
        _critic_head_kernel,
        grid=(grid_m,),
        out_shape=jax.ShapeDtypeStruct((B, 1), x.dtype),
        in_specs=[
            pl.BlockSpec((tm, K), lambda i: (i, 0)),                   # row tile of x
            pl.BlockSpec((1, K), lambda i: (0, 0)),                    # weight row (VMEM-resident)
            pl.BlockSpec(memory_space=pltpu.MemorySpace.SMEM),         # bias scalar in SMEM
        ],
        out_specs=pl.BlockSpec((tm, 1), lambda i: (i, 0)),
        compiler_params=pltpu.CompilerParams(
            # rows are independent -> v7x can split this axis across its 2 TCs
            dimension_semantics=("parallel",),
        ),
    )(x, w_row, b)


# ----------------------------------------------------------------------------
# Parameter construction (mirrors CriticHead.__init__)
# ----------------------------------------------------------------------------
def init_params(key, input_size):
    # nn.init.orthogonal_ on a (1, input_size) weight -> unit-norm random row.
    w = jax.random.normal(key, (1, input_size), jnp.float32)
    w = w / jnp.linalg.norm(w)
    b = jnp.zeros((1,), jnp.float32)   # nn.init.constant_(bias, 0)
    return {"fc_w": w, "fc_b": b}


def _ref(x, w, b):
    # High-precision reference (avoid TPU default bf16 matmul in the check).
    return jnp.dot(x, w.T, precision=jax.lax.Precision.HIGHEST) + b


# ----------------------------------------------------------------------------
if __name__ == "__main__":
    key = jax.random.PRNGKey(0)
    k_w, k_x, k_x2 = jax.random.split(key, 3)

    # Small demo shape: batch=2, hidden=32.
    B, input_size = 2, 32
    params = init_params(k_w, input_size)
    x = jax.random.normal(k_x, (B, input_size), jnp.float32)

    y = critic_head(x, params["fc_w"], params["fc_b"])
    jax.block_until_ready(y)
    assert y.shape == (B, 1)
    assert jnp.allclose(y, _ref(x, params["fc_w"], params["fc_b"]), atol=1e-5, rtol=1e-5)

    # Also exercise the tiled path: B not a multiple of the tile, no host-side padding,
    # partial last block handled by Pallas' masked store.
    B2, K2 = 300, 256
    params2 = init_params(k_w, K2)
    x2 = jax.random.normal(k_x2, (B2, K2), jnp.float32)
    y2 = critic_head(x2, params2["fc_w"], params2["fc_b"])
    jax.block_until_ready(y2)
    assert y2.shape == (B2, 1)
    assert jnp.allclose(y2, _ref(x2, params2["fc_w"], params2["fc_b"]), atol=1e-4, rtol=1e-4)

    print("KERNEL_OK")
</pallas_src>

<mosaic_0001>
module attributes {stable_mosaic.version = 11 : i64} {
  func.func @_critic_head_kernel(%arg0: i32, %arg1: memref<2x32xf32, #tpu.memory_space<vmem>>, %arg2: memref<1x32xf32, #tpu.memory_space<vmem>>, %arg3: memref<1xf32, #tpu.memory_space<smem>>, %arg4: memref<2x1xf32, #tpu.memory_space<vmem>>) attributes {dimension_semantics = [#tpu.dimension_semantics<parallel>], iteration_bounds = array<i64: 1>, scalar_prefetch = 0 : i64, scratch_operands = 0 : i64, tpu.core_type = #tpu.core_type<tc>, window_params = [{transform_indices = @transform_0, window_bounds = array<i64: 2, 32>}, {pipeline_mode = #tpu.pipeline_mode<synchronous>, transform_indices = @transform_1, window_bounds = array<i64: 1, 32>}, {transform_indices = @transform_2, window_bounds = array<i64: 1>}, {transform_indices = @transform_3, window_bounds = array<i64: 2, 1>}]} {
    %c0 = arith.constant 0 : index
    %c0_0 = arith.constant 0 : index
    %0 = vector.load %arg1[%c0, %c0_0] : memref<2x32xf32, #tpu.memory_space<vmem>>, vector<2x32xf32>
    %c0_1 = arith.constant 0 : index
    %c0_2 = arith.constant 0 : index
    %1 = vector.load %arg2[%c0_1, %c0_2] : memref<1x32xf32, #tpu.memory_space<vmem>>, vector<1x32xf32>
    %2 = vector.broadcast %1 : vector<1x32xf32> to vector<2x32xf32>
    %3 = arith.mulf %0, %2 : vector<2x32xf32>
    %cst = arith.constant dense<0.000000e+00> : vector<2xf32>
    %4 = vector.multi_reduction <add>, %3, %cst [1] : vector<2x32xf32> to vector<2xf32>
    %5 = vector.shape_cast %4 : vector<2xf32> to vector<2x1xf32>
    %c0_3 = arith.constant 0 : index
    %6 = memref.load %arg3[%c0_3] : memref<1xf32, #tpu.memory_space<smem>>
    %7 = vector.broadcast %6 : f32 to vector<2x1xf32>
    %8 = arith.addf %5, %7 : vector<2x1xf32>
    %c0_4 = arith.constant 0 : index
    %c0_5 = arith.constant 0 : index
    %9 = vector.load %arg4[%c0_4, %c0_5] : memref<2x1xf32, #tpu.memory_space<vmem>>, vector<2x1xf32>
    tpu.vector_store %arg4[%c0_4, %c0_5], %8 {strides = array<i32>} : memref<2x1xf32, #tpu.memory_space<vmem>>, vector<2x1xf32>,
    return
  }
  func.func @transform_0(%arg0: i32) -> (i32, i32) {
    %c0_i32 = arith.constant 0 : i32
    %c0_i32_0 = arith.constant 0 : i32
    return %arg0, %c0_i32 : i32, i32
  }
  func.func @transform_1(%arg0: i32) -> (i32, i32) {
    %c0_i32 = arith.constant 0 : i32
    %c0_i32_0 = arith.constant 0 : i32
    %c0_i32_1 = arith.constant 0 : i32
    return %c0_i32, %c0_i32_0 : i32, i32
  }
  func.func @transform_2(%arg0: i32) -> i32 {
    %c0_i32 = arith.constant 0 : i32
    %c0_i32_0 = arith.constant 0 : i32
    return %c0_i32 : i32
  }
  func.func @transform_3(%arg0: i32) -> (i32, i32) {
    %c0_i32 = arith.constant 0 : i32
    %c0_i32_0 = arith.constant 0 : i32
    return %arg0, %c0_i32 : i32, i32
  }
}

</mosaic_0001>

<bundles_post_ra>
// kernel: tpu_custom_call.1
= control target key start
LH: loop header
LB: loop body
LE: loop exit
PB: predicated region body
PF: predicated region fallthrough
CT: control target
= control target key end

     0   :  { %vm24_vm0 = vcmask 254976   ;;  %vm31_vm1 = vcmask 1024   ;;  %s70_s0 = inlined_call_operand.vmem [shape: f32[2,32], index: 0, kind: input, shape index: {}]   ;;  %s71_s1 = inlined_call_operand.vmem [shape: f32[1,32], index: 1, kind: input, shape index: {}]   ;;  %s72_s2 = inlined_call_operand.<no memory space> [shape: f32[1], index: 2, kind: input, shape index: {}]   ;;  %s73_s3 = inlined_call_operand.vmem [shape: f32[2,1], index: 3, kind: output, shape index: {}]  }
   0x1   :  { %v15_v0 = vld [vmem:[%s70_s0] sm:$0x3]  ;;  %v29_v4 = vstv %s72_s2 }
   0x2   :  { %v37_v1 = vld [vmem:[%s71_s1] ss:$0 sm:$0xff] }
   0x3   :  { %v23_v2 = vmul.f32 %v37_v1, %v15_v0 }
   0x5   :  { %v25_v3 = vsel %vm24_vm0, %v23_v2, 0.0 }
   0x6   :  { %26 = vadd.xlane.f32.xlu0 %v25_v3 }
  0x93   :  { %v27_v5 = vpop.xlane.xlu0 %26 }
  0x94   :  { %v30_v6 = vadd.f32 %v29_v4, %v27_v5 }
  0x96   :  { %32 = vst.msk [vmem:[%s73_s3] sm:$0x3] %vm31_vm1, %v30_v6 }

</bundles_post_ra>
